<compile_context>
chip_gen: v7x
topology: tpu7x:2x2x1
jax: 0.10.0
libtpu: 0.0.40
codegen_flags: <defaults>
</compile_context>

<pallas_src>
import jax
import jax.numpy as jnp
import numpy as np
from jax.experimental import pallas as pl
from jax.experimental.pallas import tpu as pltpu

H = 32    # hidden_size
V = 20    # output_size (vocab)
L = 10    # max_length
GP = 128  # per-gate lane padding (one full lane tile per GRU gate)


def _sigmoid(x):
    return 1.0 / (1.0 + jnp.exp(-x))


def _attn_decoder_kernel(tok_ref,                      # (T,) int32 in SMEM (scalar prefetch)
                         h0_ref, enc_ref, emb_ref,     # (1,H), (L,H), (V,H)
                         w_attn_ref, w_comb_ref,       # (2H,L), (2H,H)
                         w_ih_ref, w_hh_ref,           # (H, 3*GP) gate-padded
                         w_out_ref, bias_ref,          # (H,V), (5, 3*GP)
                         logp_ref, attn_ref, hout_ref):
    t = pl.program_id(0)

    # Initialize the carried hidden state (resident output block) at step 0.
    @pl.when(t == 0)
    def _():
        hout_ref[...] = h0_ref[...]

    h = hout_ref[...]                                   # (1, H) carried hidden
    tok = tok_ref[t]
    embedded = emb_ref[pl.ds(tok, 1), :]                # (1, H) embedding lookup
    # TODO(synk): dropout applied as identity (eval mode); training-mode dropout
    # would use pltpu.prng_seed / pltpu.prng_random_bits.

    b_attn = bias_ref[0:1, 0:L]                         # (1, L)
    b_comb = bias_ref[1:2, 0:H]                         # (1, H)
    b_ih = bias_ref[2:3, :]                             # (1, 3*GP) gate-padded
    b_hh = bias_ref[3:4, :]                             # (1, 3*GP)
    b_out = bias_ref[4:5, 0:V]                          # (1, V)

    # attn_weights = softmax(Linear(cat(embedded, hidden)))  — cat folded into
    # two matmuls against the row halves of the single (2H, L) weight.
    attn_logits = (jnp.dot(embedded, w_attn_ref[0:H, :], preferred_element_type=jnp.float32)
                   + jnp.dot(h, w_attn_ref[H:2 * H, :], preferred_element_type=jnp.float32)
                   + b_attn)                            # (1, L)
    m = jnp.max(attn_logits, axis=1, keepdims=True)
    p = jnp.exp(attn_logits - m)
    attn_w = p / jnp.sum(p, axis=1, keepdims=True)      # (1, L)

    # attn_applied = bmm(attn_weights, encoder_outputs)
    attn_applied = jnp.dot(attn_w, enc_ref[...],
                           preferred_element_type=jnp.float32)   # (1, H)

    # attn_combine(cat(embedded, attn_applied)) then ReLU
    x = (jnp.dot(embedded, w_comb_ref[0:H, :], preferred_element_type=jnp.float32)
         + jnp.dot(attn_applied, w_comb_ref[H:2 * H, :], preferred_element_type=jnp.float32)
         + b_comb)
    x = jnp.maximum(x, 0.0)                             # (1, H)

    # Single-step GRU cell (PyTorch gate order r, z, n), fused to 2 matmuls.
    # Gates are padded to 128-lane tiles, so all slices below are vreg-aligned.
    gi = jnp.dot(x, w_ih_ref[...], preferred_element_type=jnp.float32) + b_ih   # (1, 3*GP)
    gh = jnp.dot(h, w_hh_ref[...], preferred_element_type=jnp.float32) + b_hh   # (1, 3*GP)
    r = _sigmoid(gi[:, 0:H] + gh[:, 0:H])
    z = _sigmoid(gi[:, GP:GP + H] + gh[:, GP:GP + H])
    n = jnp.tanh(gi[:, 2 * GP:2 * GP + H] + r * gh[:, 2 * GP:2 * GP + H])
    h_new = (1.0 - z) * n + z * h                       # (1, H)

    # out projection + log_softmax
    logits = (jnp.dot(h_new, w_out_ref[...], preferred_element_type=jnp.float32)
              + b_out)                                  # (1, V)
    mo = jnp.max(logits, axis=1, keepdims=True)
    s = logits - mo
    logp = s - jnp.log(jnp.sum(jnp.exp(s), axis=1, keepdims=True))

    hout_ref[...] = h_new
    logp_ref[0] = logp                                  # row t of the (T,1,V) slab
    attn_ref[0] = attn_w                                # row t of the (T,1,L) slab


def prepare_params(params):
    """One-time device-side packing of PyTorch-layout params for the kernel."""
    w_ih_t = params["gru_w_ih"].T.astype(jnp.float32)   # (H, 3H), columns r|z|n
    w_hh_t = params["gru_w_hh"].T.astype(jnp.float32)
    w_ih_p = jnp.zeros((H, 3 * GP), jnp.float32)
    w_hh_p = jnp.zeros((H, 3 * GP), jnp.float32)
    b_ih_p = jnp.zeros((3 * GP,), jnp.float32)
    b_hh_p = jnp.zeros((3 * GP,), jnp.float32)
    for g in range(3):
        w_ih_p = w_ih_p.at[:, g * GP:g * GP + H].set(w_ih_t[:, g * H:(g + 1) * H])
        w_hh_p = w_hh_p.at[:, g * GP:g * GP + H].set(w_hh_t[:, g * H:(g + 1) * H])
        b_ih_p = b_ih_p.at[g * GP:g * GP + H].set(params["gru_b_ih"][g * H:(g + 1) * H])
        b_hh_p = b_hh_p.at[g * GP:g * GP + H].set(params["gru_b_hh"][g * H:(g + 1) * H])

    bias = jnp.zeros((5, 3 * GP), jnp.float32)
    bias = bias.at[0, :L].set(params["attn_b"])
    bias = bias.at[1, :H].set(params["comb_b"])
    bias = bias.at[2, :].set(b_ih_p)
    bias = bias.at[3, :].set(b_hh_p)
    bias = bias.at[4, :V].set(params["out_b"])

    return {
        "embedding": params["embedding"].astype(jnp.float32),   # (V, H)
        "w_attn": params["attn_w"].T.astype(jnp.float32),       # (2H, L)
        "w_comb": params["comb_w"].T.astype(jnp.float32),       # (2H, H)
        "w_ih": w_ih_p,                                         # (H, 3*GP)
        "w_hh": w_hh_p,                                         # (H, 3*GP)
        "w_out": params["out_w"].T.astype(jnp.float32),         # (H, V)
        "bias": bias,                                           # (5, 3*GP)
    }


@jax.jit
def attn_decoder_decode(prepared, tokens, hidden, encoder_outputs):
    """Fused T-step decode.

    tokens: int32 (T,) teacher-forced inputs; hidden: (1,1,H); encoder_outputs: (L,H).
    Returns (logp (T,V), new_hidden (1,1,H), attn_weights (T,L)).
    """
    T = tokens.shape[0]
    h0 = hidden.reshape(1, H).astype(jnp.float32)
    enc = encoder_outputs.astype(jnp.float32)

    const2 = lambda t, tok: (0, 0)

    grid_spec = pltpu.PrefetchScalarGridSpec(
        num_scalar_prefetch=1,
        grid=(T,),
        in_specs=[
            pl.BlockSpec((1, H), const2),            # h0
            pl.BlockSpec((L, H), const2),            # encoder_outputs (resident)
            pl.BlockSpec((V, H), const2),            # embedding table (resident)
            pl.BlockSpec((2 * H, L), const2),        # attn weight
            pl.BlockSpec((2 * H, H), const2),        # attn_combine weight
            pl.BlockSpec((H, 3 * GP), const2),       # GRU W_ih (gate-padded)
            pl.BlockSpec((H, 3 * GP), const2),       # GRU W_hh (gate-padded)
            pl.BlockSpec((H, V), const2),            # out weight
            pl.BlockSpec((5, 3 * GP), const2),       # packed biases
        ],
        out_specs=[
            pl.BlockSpec((1, 1, V), lambda t, tok: (t, 0, 0)),   # logp slab, row t
            pl.BlockSpec((1, 1, L), lambda t, tok: (t, 0, 0)),   # attn slab, row t
            pl.BlockSpec((1, H), const2),                        # carried hidden
        ],
    )

    per_step_macs = (2 * H * L) + (L * H) + (2 * H * H) + (2 * H * 3 * GP) + (H * V)
    flops = 2 * T * per_step_macs
    bytes_accessed = 4 * (V * H + 2 * H * L + 2 * H * H + 2 * H * 3 * GP + H * V
                          + 5 * 3 * GP + L * H + H + T * (V + L) + H) + 4 * T

    logp, attn_w, h_new = pl.pallas_call(
        _attn_decoder_kernel,
        out_shape=(jax.ShapeDtypeStruct((T, 1, V), jnp.float32),
                   jax.ShapeDtypeStruct((T, 1, L), jnp.float32),
                   jax.ShapeDtypeStruct((1, H), jnp.float32)),
        grid_spec=grid_spec,
        compiler_params=pltpu.CompilerParams(dimension_semantics=("arbitrary",)),
        cost_estimate=pl.CostEstimate(flops=flops,
                                      transcendentals=130 * T,
                                      bytes_accessed=bytes_accessed),
    )(tokens.astype(jnp.int32), h0, enc,
      prepared["embedding"], prepared["w_attn"], prepared["w_comb"],
      prepared["w_ih"], prepared["w_hh"], prepared["w_out"], prepared["bias"])

    return logp.reshape(T, V), h_new.reshape(1, 1, H), attn_w.reshape(T, L)


def attn_decoder_forward(prepared, tok, hidden, encoder_outputs):
    """Single-step forward matching the PyTorch module's signature/semantics."""
    logp, h_new, attn_w = attn_decoder_decode(prepared, tok.reshape(1), hidden,
                                              encoder_outputs)
    return logp, h_new, attn_w


# ----------------------------- pure-JAX reference -----------------------------

def reference_forward(params, tok, hidden, enc):
    """Pure-JAX replica of the PyTorch forward (dropout in eval mode)."""
    e = params["embedding"][tok[0]][None, :]
    h = hidden.reshape(1, H)
    cat1 = jnp.concatenate([e, h], axis=1)
    aw = jax.nn.softmax(cat1 @ params["attn_w"].T + params["attn_b"], axis=1)
    aa = aw @ enc
    cat2 = jnp.concatenate([e, aa], axis=1)
    x = jax.nn.relu(cat2 @ params["comb_w"].T + params["comb_b"])
    gi = x @ params["gru_w_ih"].T + params["gru_b_ih"]
    gh = h @ params["gru_w_hh"].T + params["gru_b_hh"]
    r = jax.nn.sigmoid(gi[:, :H] + gh[:, :H])
    z = jax.nn.sigmoid(gi[:, H:2 * H] + gh[:, H:2 * H])
    n = jnp.tanh(gi[:, 2 * H:] + r * gh[:, 2 * H:])
    hn = (1 - z) * n + z * h
    logp = jax.nn.log_softmax(hn @ params["out_w"].T + params["out_b"], axis=1)
    return logp, hn.reshape(1, 1, H), aw


def reference_decode(params, tokens, hidden, enc):
    h = hidden
    logps, attns = [], []
    for t in range(tokens.shape[0]):
        logp, h, aw = reference_forward(params, tokens[t:t + 1], h, enc)
        logps.append(logp)
        attns.append(aw)
    return jnp.concatenate(logps, 0), h, jnp.concatenate(attns, 0)


def init_params(key):
    ks = jax.random.split(key, 11)

    def unif(k, shape, fan_in):
        b = 1.0 / np.sqrt(fan_in)
        return jax.random.uniform(k, shape, jnp.float32, -b, b)

    return {
        "embedding": jax.random.normal(ks[0], (V, H), jnp.float32),
        "attn_w":   unif(ks[1], (L, 2 * H), 2 * H),
        "attn_b":   unif(ks[2], (L,), 2 * H),
        "comb_w":   unif(ks[3], (H, 2 * H), 2 * H),
        "comb_b":   unif(ks[4], (H,), 2 * H),
        "gru_w_ih": unif(ks[5], (3 * H, H), H),
        "gru_w_hh": unif(ks[6], (3 * H, H), H),
        "gru_b_ih": unif(ks[7], (3 * H,), H),
        "gru_b_hh": unif(ks[8], (3 * H,), H),
        "out_w":    unif(ks[9], (V, H), H),
        "out_b":    unif(ks[10], (V,), H),
    }


if __name__ == "__main__":
    key = jax.random.PRNGKey(0)
    pkey, ekey, tkey = jax.random.split(key, 3)
    params = init_params(pkey)
    prepared = prepare_params(params)          # one-time weight packing

    T = 8                                      # fused decode steps
    tokens = jax.random.randint(tkey, (T,), 0, V, dtype=jnp.int32)
    hidden = jnp.zeros((1, 1, H), dtype=jnp.float32)         # initHidden()
    encoder_outputs = jax.random.normal(ekey, (L, H), jnp.float32)

    # Fused multi-step decode (one pallas_call for all T steps).
    logp, h_new, attn_w = attn_decoder_decode(prepared, tokens, hidden, encoder_outputs)
    jax.block_until_ready((logp, h_new, attn_w))

    ref_logp, ref_h, ref_aw = reference_decode(params, tokens, hidden, encoder_outputs)
    np.testing.assert_allclose(np.asarray(logp), np.asarray(ref_logp), rtol=1e-4, atol=1e-4)
    np.testing.assert_allclose(np.asarray(h_new), np.asarray(ref_h), rtol=1e-4, atol=1e-4)
    np.testing.assert_allclose(np.asarray(attn_w), np.asarray(ref_aw), rtol=1e-4, atol=1e-4)
    assert logp.shape == (T, V) and h_new.shape == (1, 1, H) and attn_w.shape == (T, L)

    # Single-step path (module-equivalent forward) still matches.
    l1, h1, a1 = attn_decoder_forward(prepared, tokens[0:1], hidden, encoder_outputs)
    rl1, rh1, ra1 = reference_forward(params, tokens[0:1], hidden, encoder_outputs)
    np.testing.assert_allclose(np.asarray(l1), np.asarray(rl1), rtol=1e-4, atol=1e-4)
    np.testing.assert_allclose(np.asarray(h1), np.asarray(rh1), rtol=1e-4, atol=1e-4)
    np.testing.assert_allclose(np.asarray(a1), np.asarray(ra1), rtol=1e-4, atol=1e-4)
    assert l1.shape == (1, V) and h1.shape == (1, 1, H) and a1.shape == (1, L)

    print("KERNEL_OK")
</pallas_src>

<mosaic_0001>
module attributes {stable_mosaic.version = 11 : i64} {
  func.func @_attn_decoder_kernel(%arg0: i32, %arg1: memref<8xi32, #tpu.memory_space<smem>>, %arg2: memref<1x32xf32, #tpu.memory_space<vmem>>, %arg3: memref<10x32xf32, #tpu.memory_space<vmem>>, %arg4: memref<20x32xf32, #tpu.memory_space<vmem>>, %arg5: memref<64x10xf32, #tpu.memory_space<vmem>>, %arg6: memref<64x32xf32, #tpu.memory_space<vmem>>, %arg7: memref<32x384xf32, #tpu.memory_space<vmem>>, %arg8: memref<32x384xf32, #tpu.memory_space<vmem>>, %arg9: memref<32x20xf32, #tpu.memory_space<vmem>>, %arg10: memref<5x384xf32, #tpu.memory_space<vmem>>, %arg11: memref<1x1x20xf32, #tpu.memory_space<vmem>>, %arg12: memref<1x1x10xf32, #tpu.memory_space<vmem>>, %arg13: memref<1x32xf32, #tpu.memory_space<vmem>>) attributes {dimension_semantics = [#tpu.dimension_semantics<arbitrary>], iteration_bounds = array<i64: 8>, scalar_prefetch = 1 : i64, scratch_operands = 0 : i64, tpu.core_type = #tpu.core_type<tc>, window_params = [{pipeline_mode = #tpu.pipeline_mode<synchronous>, transform_indices = @transform_0, window_bounds = array<i64: 1, 32>}, {pipeline_mode = #tpu.pipeline_mode<synchronous>, transform_indices = @transform_1, window_bounds = array<i64: 10, 32>}, {pipeline_mode = #tpu.pipeline_mode<synchronous>, transform_indices = @transform_2, window_bounds = array<i64: 20, 32>}, {pipeline_mode = #tpu.pipeline_mode<synchronous>, transform_indices = @transform_3, window_bounds = array<i64: 64, 10>}, {pipeline_mode = #tpu.pipeline_mode<synchronous>, transform_indices = @transform_4, window_bounds = array<i64: 64, 32>}, {pipeline_mode = #tpu.pipeline_mode<synchronous>, transform_indices = @transform_5, window_bounds = array<i64: 32, 384>}, {pipeline_mode = #tpu.pipeline_mode<synchronous>, transform_indices = @transform_6, window_bounds = array<i64: 32, 384>}, {pipeline_mode = #tpu.pipeline_mode<synchronous>, transform_indices = @transform_7, window_bounds = array<i64: 32, 20>}, {pipeline_mode = #tpu.pipeline_mode<synchronous>, transform_indices = @transform_8, window_bounds = array<i64: 5, 384>}, {transform_indices = @transform_9, window_bounds = array<i64: 1, 1, 20>}, {transform_indices = @transform_10, window_bounds = array<i64: 1, 1, 10>}, {pipeline_mode = #tpu.pipeline_mode<synchronous>, transform_indices = @transform_11, window_bounds = array<i64: 1, 32>}]} {
    %c0_i32 = arith.constant 0 : i32
    %0 = arith.cmpi eq, %arg0, %c0_i32 : i32
    %1 = arith.extui %0 : i1 to i32
    %c0_i32_0 = arith.constant 0 : i32
    %2 = arith.cmpi ne, %1, %c0_i32_0 : i32
    scf.if %2 {
      %c0_51 = arith.constant 0 : index
      %c0_52 = arith.constant 0 : index
      %94 = vector.load %arg2[%c0_51, %c0_52] : memref<1x32xf32, #tpu.memory_space<vmem>>, vector<1x32xf32>
      %c0_53 = arith.constant 0 : index
      %c0_54 = arith.constant 0 : index
      %95 = vector.load %arg13[%c0_53, %c0_54] : memref<1x32xf32, #tpu.memory_space<vmem>>, vector<1x32xf32>
      tpu.vector_store %arg13[%c0_53, %c0_54], %94 {strides = array<i32>} : memref<1x32xf32, #tpu.memory_space<vmem>>, vector<1x32xf32>,
    } else {
    }
    %c0 = arith.constant 0 : index
    %c0_1 = arith.constant 0 : index
    %3 = vector.load %arg13[%c0, %c0_1] : memref<1x32xf32, #tpu.memory_space<vmem>>, vector<1x32xf32>
    %4 = arith.index_cast %arg0 : i32 to index
    %5 = memref.load %arg1[%4] : memref<8xi32, #tpu.memory_space<smem>>
    %6 = arith.index_cast %5 : i32 to index
    %c0_2 = arith.constant 0 : index
    %7 = vector.load %arg4[%6, %c0_2] : memref<20x32xf32, #tpu.memory_space<vmem>>, vector<1x32xf32>
    %c0_3 = arith.constant 0 : index
    %c0_4 = arith.constant 0 : index
    %8 = vector.load %arg10[%c0_3, %c0_4] : memref<5x384xf32, #tpu.memory_space<vmem>>, vector<1x10xf32>
    %c1 = arith.constant 1 : index
    %c0_5 = arith.constant 0 : index
    %9 = vector.load %arg10[%c1, %c0_5] : memref<5x384xf32, #tpu.memory_space<vmem>>, vector<1x32xf32>
    %c2 = arith.constant 2 : index
    %c0_6 = arith.constant 0 : index
    %10 = vector.load %arg10[%c2, %c0_6] : memref<5x384xf32, #tpu.memory_space<vmem>>, vector<1x384xf32>
    %c3 = arith.constant 3 : index
    %c0_7 = arith.constant 0 : index
    %11 = vector.load %arg10[%c3, %c0_7] : memref<5x384xf32, #tpu.memory_space<vmem>>, vector<1x384xf32>
    %c4 = arith.constant 4 : index
    %c0_8 = arith.constant 0 : index
    %12 = vector.load %arg10[%c4, %c0_8] : memref<5x384xf32, #tpu.memory_space<vmem>>, vector<1x20xf32>
    %c0_9 = arith.constant 0 : index
    %c0_10 = arith.constant 0 : index
    %13 = vector.load %arg5[%c0_9, %c0_10] : memref<64x10xf32, #tpu.memory_space<vmem>>, vector<32x10xf32>
    %cst = arith.constant dense<0.000000e+00> : vector<1x10xf32>
    %14 = tpu.matmul %7, %13, %cst {dimension_numbers = #tpu.dot_dimension_numbers<[1], [0], [0], [1], [0, 0, 1, 1], [], []>} : vector<1x32xf32>, vector<32x10xf32>, vector<1x10xf32> -> vector<1x10xf32>
    %c32 = arith.constant 32 : index
    %c0_11 = arith.constant 0 : index
    %15 = vector.load %arg5[%c32, %c0_11] : memref<64x10xf32, #tpu.memory_space<vmem>>, vector<32x10xf32>
    %cst_12 = arith.constant dense<0.000000e+00> : vector<1x10xf32>
    %16 = tpu.matmul %3, %15, %cst_12 {dimension_numbers = #tpu.dot_dimension_numbers<[1], [0], [0], [1], [0, 0, 1, 1], [], []>} : vector<1x32xf32>, vector<32x10xf32>, vector<1x10xf32> -> vector<1x10xf32>
    %17 = arith.addf %14, %16 : vector<1x10xf32>
    %18 = arith.addf %17, %8 : vector<1x10xf32>
    %cst_13 = arith.constant dense<0xFF800000> : vector<1xf32>
    %19 = vector.multi_reduction <maximumf>, %18, %cst_13 [1] : vector<1x10xf32> to vector<1xf32>
    %20 = vector.shape_cast %19 : vector<1xf32> to vector<1x1xf32>
    %21 = vector.broadcast %20 : vector<1x1xf32> to vector<1x10xf32>
    %22 = arith.subf %18, %21 : vector<1x10xf32>
    %23 = math.exp %22 : vector<1x10xf32>
    %cst_14 = arith.constant dense<0.000000e+00> : vector<1xf32>
    %24 = vector.multi_reduction <add>, %23, %cst_14 [1] : vector<1x10xf32> to vector<1xf32>
    %25 = vector.shape_cast %24 : vector<1xf32> to vector<1x1xf32>
    %26 = vector.broadcast %25 : vector<1x1xf32> to vector<1x10xf32>
    %27 = arith.divf %23, %26 : vector<1x10xf32>
    %c0_15 = arith.constant 0 : index
    %c0_16 = arith.constant 0 : index
    %28 = vector.load %arg3[%c0_15, %c0_16] : memref<10x32xf32, #tpu.memory_space<vmem>>, vector<10x32xf32>
    %cst_17 = arith.constant dense<0.000000e+00> : vector<1x32xf32>
    %29 = tpu.matmul %27, %28, %cst_17 {dimension_numbers = #tpu.dot_dimension_numbers<[1], [0], [0], [1], [0, 0, 1, 1], [], []>} : vector<1x10xf32>, vector<10x32xf32>, vector<1x32xf32> -> vector<1x32xf32>
    %c0_18 = arith.constant 0 : index
    %c0_19 = arith.constant 0 : index
    %30 = vector.load %arg6[%c0_18, %c0_19] : memref<64x32xf32, #tpu.memory_space<vmem>>, vector<32x32xf32>
    %cst_20 = arith.constant dense<0.000000e+00> : vector<1x32xf32>
    %31 = tpu.matmul %7, %30, %cst_20 {dimension_numbers = #tpu.dot_dimension_numbers<[1], [0], [0], [1], [0, 0, 1, 1], [], []>} : vector<1x32xf32>, vector<32x32xf32>, vector<1x32xf32> -> vector<1x32xf32>
    %c32_21 = arith.constant 32 : index
    %c0_22 = arith.constant 0 : index
    %32 = vector.load %arg6[%c32_21, %c0_22] : memref<64x32xf32, #tpu.memory_space<vmem>>, vector<32x32xf32>
    %cst_23 = arith.constant dense<0.000000e+00> : vector<1x32xf32>
    %33 = tpu.matmul %29, %32, %cst_23 {dimension_numbers = #tpu.dot_dimension_numbers<[1], [0], [0], [1], [0, 0, 1, 1], [], []>} : vector<1x32xf32>, vector<32x32xf32>, vector<1x32xf32> -> vector<1x32xf32>
    %34 = arith.addf %31, %33 : vector<1x32xf32>
    %35 = arith.addf %34, %9 : vector<1x32xf32>
    %cst_24 = arith.constant 0.000000e+00 : f32
    %36 = vector.broadcast %cst_24 : f32 to vector<1x32xf32>
    %37 = arith.maximumf %35, %36 : vector<1x32xf32>
    %c0_25 = arith.constant 0 : index
    %c0_26 = arith.constant 0 : index
    %38 = vector.load %arg7[%c0_25, %c0_26] : memref<32x384xf32, #tpu.memory_space<vmem>>, vector<32x384xf32>
    %cst_27 = arith.constant dense<0.000000e+00> : vector<1x384xf32>
    %39 = tpu.matmul %37, %38, %cst_27 {dimension_numbers = #tpu.dot_dimension_numbers<[1], [0], [0], [1], [0, 0, 1, 1], [], []>} : vector<1x32xf32>, vector<32x384xf32>, vector<1x384xf32> -> vector<1x384xf32>
    %40 = arith.addf %39, %10 : vector<1x384xf32>
    %c0_28 = arith.constant 0 : index
    %c0_29 = arith.constant 0 : index
    %41 = vector.load %arg8[%c0_28, %c0_29] : memref<32x384xf32, #tpu.memory_space<vmem>>, vector<32x384xf32>
    %cst_30 = arith.constant dense<0.000000e+00> : vector<1x384xf32>
    %42 = tpu.matmul %3, %41, %cst_30 {dimension_numbers = #tpu.dot_dimension_numbers<[1], [0], [0], [1], [0, 0, 1, 1], [], []>} : vector<1x32xf32>, vector<32x384xf32>, vector<1x384xf32> -> vector<1x384xf32>
    %43 = arith.addf %42, %11 : vector<1x384xf32>
    %44 = vector.extract_strided_slice %40 {offsets = [0, 0], sizes = [1, 32], strides = [1, 1]} : vector<1x384xf32> to vector<1x32xf32>
    %45 = vector.extract_strided_slice %43 {offsets = [0, 0], sizes = [1, 32], strides = [1, 1]} : vector<1x384xf32> to vector<1x32xf32>
    %46 = arith.addf %44, %45 : vector<1x32xf32>
    %cst_31 = arith.constant 0.000000e+00 : f32
    %47 = vector.broadcast %cst_31 : f32 to vector<1x32xf32>
    %48 = arith.subf %47, %46 : vector<1x32xf32>
    %49 = math.exp %48 : vector<1x32xf32>
    %cst_32 = arith.constant 1.000000e+00 : f32
    %50 = vector.broadcast %cst_32 : f32 to vector<1x32xf32>
    %51 = arith.addf %50, %49 : vector<1x32xf32>
    %cst_33 = arith.constant 1.000000e+00 : f32
    %52 = vector.broadcast %cst_33 : f32 to vector<1x32xf32>
    %53 = arith.divf %52, %51 : vector<1x32xf32>
    %54 = vector.extract_strided_slice %40 {offsets = [0, 128], sizes = [1, 32], strides = [1, 1]} : vector<1x384xf32> to vector<1x32xf32>
    %55 = vector.extract_strided_slice %43 {offsets = [0, 128], sizes = [1, 32], strides = [1, 1]} : vector<1x384xf32> to vector<1x32xf32>
    %56 = arith.addf %54, %55 : vector<1x32xf32>
    %cst_34 = arith.constant 0.000000e+00 : f32
    %57 = vector.broadcast %cst_34 : f32 to vector<1x32xf32>
    %58 = arith.subf %57, %56 : vector<1x32xf32>
    %59 = math.exp %58 : vector<1x32xf32>
    %cst_35 = arith.constant 1.000000e+00 : f32
    %60 = vector.broadcast %cst_35 : f32 to vector<1x32xf32>
    %61 = arith.addf %60, %59 : vector<1x32xf32>
    %cst_36 = arith.constant 1.000000e+00 : f32
    %62 = vector.broadcast %cst_36 : f32 to vector<1x32xf32>
    %63 = arith.divf %62, %61 : vector<1x32xf32>
    %64 = vector.extract_strided_slice %40 {offsets = [0, 256], sizes = [1, 32], strides = [1, 1]} : vector<1x384xf32> to vector<1x32xf32>
    %65 = vector.extract_strided_slice %43 {offsets = [0, 256], sizes = [1, 32], strides = [1, 1]} : vector<1x384xf32> to vector<1x32xf32>
    %66 = arith.mulf %53, %65 : vector<1x32xf32>
    %67 = arith.addf %64, %66 : vector<1x32xf32>
    %68 = math.tanh %67 : vector<1x32xf32>
    %cst_37 = arith.constant 1.000000e+00 : f32
    %69 = vector.broadcast %cst_37 : f32 to vector<1x32xf32>
    %70 = arith.subf %69, %63 : vector<1x32xf32>
    %71 = arith.mulf %70, %68 : vector<1x32xf32>
    %72 = arith.mulf %63, %3 : vector<1x32xf32>
    %73 = arith.addf %71, %72 : vector<1x32xf32>
    %c0_38 = arith.constant 0 : index
    %c0_39 = arith.constant 0 : index
    %74 = vector.load %arg9[%c0_38, %c0_39] : memref<32x20xf32, #tpu.memory_space<vmem>>, vector<32x20xf32>
    %cst_40 = arith.constant dense<0.000000e+00> : vector<1x20xf32>
    %75 = tpu.matmul %73, %74, %cst_40 {dimension_numbers = #tpu.dot_dimension_numbers<[1], [0], [0], [1], [0, 0, 1, 1], [], []>} : vector<1x32xf32>, vector<32x20xf32>, vector<1x20xf32> -> vector<1x20xf32>
    %76 = arith.addf %75, %12 : vector<1x20xf32>
    %cst_41 = arith.constant dense<0xFF800000> : vector<1xf32>
    %77 = vector.multi_reduction <maximumf>, %76, %cst_41 [1] : vector<1x20xf32> to vector<1xf32>
    %78 = vector.shape_cast %77 : vector<1xf32> to vector<1x1xf32>
    %79 = vector.broadcast %78 : vector<1x1xf32> to vector<1x20xf32>
    %80 = arith.subf %76, %79 : vector<1x20xf32>
    %81 = math.exp %80 : vector<1x20xf32>
    %cst_42 = arith.constant dense<0.000000e+00> : vector<1xf32>
    %82 = vector.multi_reduction <add>, %81, %cst_42 [1] : vector<1x20xf32> to vector<1xf32>
    %83 = vector.shape_cast %82 : vector<1xf32> to vector<1x1xf32>
    %84 = math.log %83 : vector<1x1xf32>
    %85 = vector.broadcast %84 : vector<1x1xf32> to vector<1x20xf32>
    %86 = arith.subf %80, %85 : vector<1x20xf32>
    %c0_43 = arith.constant 0 : index
    %c0_44 = arith.constant 0 : index
    %87 = vector.load %arg13[%c0_43, %c0_44] : memref<1x32xf32, #tpu.memory_space<vmem>>, vector<1x32xf32>
    tpu.vector_store %arg13[%c0_43, %c0_44], %73 {strides = array<i32>} : memref<1x32xf32, #tpu.memory_space<vmem>>, vector<1x32xf32>,
    %c0_45 = arith.constant 0 : index
    %c0_46 = arith.constant 0 : index
    %c0_47 = arith.constant 0 : index
    %88 = vector.load %arg11[%c0_45, %c0_46, %c0_47] : memref<1x1x20xf32, #tpu.memory_space<vmem>>, vector<1x1x20xf32>
    %89 = vector.shape_cast %88 : vector<1x1x20xf32> to vector<1x20xf32>
    %90 = vector.shape_cast %86 : vector<1x20xf32> to vector<1x1x20xf32>
    tpu.vector_store %arg11[%c0_45, %c0_46, %c0_47], %90 {strides = array<i32>} : memref<1x1x20xf32, #tpu.memory_space<vmem>>, vector<1x1x20xf32>,
    %c0_48 = arith.constant 0 : index
    %c0_49 = arith.constant 0 : index
    %c0_50 = arith.constant 0 : index
    %91 = vector.load %arg12[%c0_48, %c0_49, %c0_50] : memref<1x1x10xf32, #tpu.memory_space<vmem>>, vector<1x1x10xf32>
    %92 = vector.shape_cast %91 : vector<1x1x10xf32> to vector<1x10xf32>
    %93 = vector.shape_cast %27 : vector<1x10xf32> to vector<1x1x10xf32>
    tpu.vector_store %arg12[%c0_48, %c0_49, %c0_50], %93 {strides = array<i32>} : memref<1x1x10xf32, #tpu.memory_space<vmem>>, vector<1x1x10xf32>,
    return
  }
  func.func @transform_0(%arg0: i32, %arg1: memref<8xi32, #tpu.memory_space<smem>>) -> (i32, i32) {
    %c0_i32 = arith.constant 0 : i32
    %c0_i32_0 = arith.constant 0 : i32
    %c0_i32_1 = arith.constant 0 : i32
    return %c0_i32, %c0_i32_0 : i32, i32
  }
  func.func @transform_1(%arg0: i32, %arg1: memref<8xi32, #tpu.memory_space<smem>>) -> (i32, i32) {
    %c0_i32 = arith.constant 0 : i32
    %c0_i32_0 = arith.constant 0 : i32
    %c0_i32_1 = arith.constant 0 : i32
    return %c0_i32, %c0_i32_0 : i32, i32
  }
  func.func @transform_2(%arg0: i32, %arg1: memref<8xi32, #tpu.memory_space<smem>>) -> (i32, i32) {
    %c0_i32 = arith.constant 0 : i32
    %c0_i32_0 = arith.constant 0 : i32
    %c0_i32_1 = arith.constant 0 : i32
    return %c0_i32, %c0_i32_0 : i32, i32
  }
  func.func @transform_3(%arg0: i32, %arg1: memref<8xi32, #tpu.memory_space<smem>>) -> (i32, i32) {
    %c0_i32 = arith.constant 0 : i32
    %c0_i32_0 = arith.constant 0 : i32
    %c0_i32_1 = arith.constant 0 : i32
    return %c0_i32, %c0_i32_0 : i32, i32
  }
  func.func @transform_4(%arg0: i32, %arg1: memref<8xi32, #tpu.memory_space<smem>>) -> (i32, i32) {
    %c0_i32 = arith.constant 0 : i32
    %c0_i32_0 = arith.constant 0 : i32
    %c0_i32_1 = arith.constant 0 : i32
    return %c0_i32, %c0_i32_0 : i32, i32
  }
  func.func @transform_5(%arg0: i32, %arg1: memref<8xi32, #tpu.memory_space<smem>>) -> (i32, i32) {
    %c0_i32 = arith.constant 0 : i32
    %c0_i32_0 = arith.constant 0 : i32
    %c0_i32_1 = arith.constant 0 : i32
    return %c0_i32, %c0_i32_0 : i32, i32
  }
  func.func @transform_6(%arg0: i32, %arg1: memref<8xi32, #tpu.memory_space<smem>>) -> (i32, i32) {
    %c0_i32 = arith.constant 0 : i32
    %c0_i32_0 = arith.constant 0 : i32
    %c0_i32_1 = arith.constant 0 : i32
    return %c0_i32, %c0_i32_0 : i32, i32
  }
  func.func @transform_7(%arg0: i32, %arg1: memref<8xi32, #tpu.memory_space<smem>>) -> (i32, i32) {
    %c0_i32 = arith.constant 0 : i32
    %c0_i32_0 = arith.constant 0 : i32
    %c0_i32_1 = arith.constant 0 : i32
    return %c0_i32, %c0_i32_0 : i32, i32
  }
  func.func @transform_8(%arg0: i32, %arg1: memref<8xi32, #tpu.memory_space<smem>>) -> (i32, i32) {
    %c0_i32 = arith.constant 0 : i32
    %c0_i32_0 = arith.constant 0 : i32
    %c0_i32_1 = arith.constant 0 : i32
    return %c0_i32, %c0_i32_0 : i32, i32
  }
  func.func @transform_9(%arg0: i32, %arg1: memref<8xi32, #tpu.memory_space<smem>>) -> (i32, i32, i32) {
    %c0_i32 = arith.constant 0 : i32
    %c0_i32_0 = arith.constant 0 : i32
    %c0_i32_1 = arith.constant 0 : i32
    return %arg0, %c0_i32, %c0_i32_0 : i32, i32, i32
  }
  func.func @transform_10(%arg0: i32, %arg1: memref<8xi32, #tpu.memory_space<smem>>) -> (i32, i32, i32) {
    %c0_i32 = arith.constant 0 : i32
    %c0_i32_0 = arith.constant 0 : i32
    %c0_i32_1 = arith.constant 0 : i32
    return %arg0, %c0_i32, %c0_i32_0 : i32, i32, i32
  }
  func.func @transform_11(%arg0: i32, %arg1: memref<8xi32, #tpu.memory_space<smem>>) -> (i32, i32) {
    %c0_i32 = arith.constant 0 : i32
    %c0_i32_0 = arith.constant 0 : i32
    %c0_i32_1 = arith.constant 0 : i32
    return %c0_i32, %c0_i32_0 : i32, i32
  }
}

</mosaic_0001>

<bundles_post_ra>
// kernel: attn_decoder_decode.1
= control target key start
LH: loop header
LB: loop body
LE: loop exit
PB: predicated region body
PF: predicated region fallthrough
CT: control target
= control target key end

     0   :  { %s2546_s0 = inlined_call_operand.vmem [shape: s32[8], index: 0, kind: input, shape index: {}]   ;;  %s2547_s1 = inlined_call_operand.vmem [shape: f32[1,32], index: 1, kind: input, shape index: {}]   ;;  %s2548_s2 = inlined_call_operand.hbm [shape: f32[10,32], index: 2, kind: input, shape index: {}]   ;;  %s2549_s3 = inlined_call_operand.hbm [shape: f32[20,32], index: 3, kind: input, shape index: {}]   ;;  %s2550_s4 = inlined_call_operand.vmem [shape: f32[64,10], index: 4, kind: input, shape index: {}]   ;;  %s2551_s5 = inlined_call_operand.vmem [shape: f32[64,32], index: 5, kind: input, shape index: {}]   ;;  %s2552_s6 = inlined_call_operand.vmem [shape: f32[32,384], index: 6, kind: input, shape index: {}]   ;;  %s2553_s7 = inlined_call_operand.vmem [shape: f32[32,384], index: 7, kind: input, shape index: {}]   ;;  %s2554_s8 = inlined_call_operand.vmem [shape: f32[32,20], index: 8, kind: input, shape index: {}]   ;;  %s2555_s9 = inlined_call_operand.hbm [shape: f32[5,384], index: 9, kind: input, shape index: {}]   ;;  %s2556_s10 = inlined_call_operand.hbm [shape: f32[8,1,20], index: 10, kind: output, shape index: {0}]   ;;  %s2557_s11 = inlined_call_operand.hbm [shape: f32[8,1,10], index: 11, kind: output, shape index: {1}]   ;;  %s2558_s12 = inlined_call_operand.hbm [shape: f32[1,32], index: 12, kind: output, shape index: {2}]  }
   0x1   :  { %2572 = sst [smem:[#allocation26_spill]] %s2556_s10  ;;  %s18_s23 = sshll.u32 %s2546_s0, 4  ;;  %s19_s23 = int_to_ptr.vmem [resolvable:$true] %s18_s23 }
   0x2   :  { %s1773_s24 = scalar_lea.vmem %s19_s23, 16  ;;  %p1778_p1 = scmp.lt.s32.totalorder %s19_s23, %s19_s23 }
   0x3   :  { %p1774_p0 = scmp.ne.s32.totalorder %s19_s23, %s1773_s24  ;;  %p1779_p2 = scmp.lt.s32.totalorder %s1773_s24, %s1773_s24 }
   0x5   :  { %p1780_p3 = por %p1779_p2, %p1778_p1 }
   0x7   :  { %p1781_p4 = pnand %p1780_p3, %p1774_p0 }
   0x9   :  { %1784 = shalt.err (!%p1781_p4)  }
   0xa   :  { %s2005_s25 = smov [#allocation3]  }
   0xb   :  { %21 = dma.vmem_to_smem %s19_s23, 16, %s2005_s25, [#allocation2] }
   0xc   :  { %1967 = dma.done.wait [#allocation2], 16 }
   0xd   :  { %1968 = vsyncadd [#allocation2], 4294967280 }
   0xe   :  { %23 = sfence }
   0xf   :  { %24 = vsyncpa [#allocation5], 0 }
  0x10   :  { %25 = vsyncpa [#allocation8], 0 }
  0x11   :  { %26 = vsyncpa [#allocation6], 0 }
  0x12   :  { %28 = vsyncpa [#allocation6 + $0x1], 0 }
  0x13   :  { %29 = vsyncpa [#allocation12], 0 }
  0x14   :  { %31 = vsyncpa [#allocation12 + $0x1], 0  ;;  %s2086_s0 = smov 0   ;;  %s2088_s26 = smov 0  }
  0x15   :  { %s2090_s27 = smov 0   ;;  %s2092_s28 = smov 0  }
  0x16 LB: > { %2573 = sst [smem:[#allocation20_spill]] %s1991_s0  ;;  %s2107_s29 = sadd.s32 4294967295, %s2003_s28   ;;  %s2003_s28 = sphi %s2092_s28, %s2603_s28   ;;  %s1999_s27 = sphi %s2090_s27, %s2605_s27   ;;  %s1995_s26 = sphi %s2088_s26, %s2607_s26   ;;  %s1991_s0 = sphi %s2086_s0, %s2606_s0  }
  0x17   : > { %2574 = sst [smem:[#allocation21_spill]] %s1999_s27  ;;  %s2559_s30 = sadd.s32 4294967294, %s2003_s28  }
  0x18   : > { %2575 = sst [smem:[#allocation22_spill]] %s2003_s28  ;;  %s2111_s13 = sadd.s32 1, %s2003_s28  }
  0x19   : > { %2576 = sst [smem:[#allocation23_spill]] %s2111_s13  ;;  %s233_s14 = sadd.s32 1, %s1999_s27 }
  0x1a   : > { %s230_s15 = ssub.s32 %s2003_s28, %s2111_s13  ;;  %p243_p5 = scmp.ne.s32.totalorder %s1999_s27, %s1995_s26 }
  0x1b   : > { %p231_p6 = scmp.eq.s32.totalorder %s230_s15, 0  ;;  %p2563_p7 = scmp.eq.s32.totalorder %s2107_s29, 7 }
  0x1c   : > { %p249_p8 = scmp.ne.s32.totalorder %s1995_s26, %s1991_s0  ;;  %p250_p9 = scmp.eq.s32.totalorder %s2559_s30, 7 }
  0x1d   : > { %s2124_s16 = scalar_select %p231_p6, %s1999_s27, %s233_s14  }
  0x1e   : > { %p2128_p10 = por %p2563_p7, %p243_p5  ;;  %p2132_p11 = por %p250_p9, %p249_p8 }
  0x1f   : > { %2577 = sst [smem:[#allocation24_spill]] %s2124_s16  ;;  %p1450_p12 = scmp.ge.s32.totalorder %s2003_s28, 1 }
  0x20   : > { %s2578_s17 = scalar_select %p2128_p10, 1, 0 }
  0x21   : > { %s2579_s18 = scalar_select %p2132_p11, 1, 0 }
  0x22   : > { %p304_p13 = scmp.lt.s32.totalorder %s2003_s28, 9  ;;  %p2564_p1 = scmp.eq.s32.totalorder %s2107_s29, 0 }
  0x23   : > { %2580 = sst [smem:[#allocation25_spill]] %s2579_s18  ;;  %s2006_s20 = smov [#allocation7]  }
  0x24   : > { %p2140_p2 = pnand %p1450_p12, %p304_p13  ;;  %s332_s21 = sshll.u32 %s2006_s20, 4  ;;  %s2146_s21 = int_to_ptr.vmem [resolvable:$true] %s332_s21 }
  0x25   : > { %s2007_s23 = smov [#allocation4]   ;;  %s2008_s25 = smov [#allocation9]  }
  0x26   : > { %s2581_s19 = scalar_select %p2140_p2, 1, 0 }
  0x27   : > { %p1686_p3 = pneg %p2140_p2  ;;  %s319_s24 = sshll.u32 %s2007_s23, 4  ;;  %s2154_s24 = int_to_ptr.vmem [resolvable:$true] %s319_s24 }
  0x28   : > { %s2156_s14 = sshll.u32 %s2008_s25, 4  ;;  %s1785_s16 = scalar_lea.hbm %s2549_s3, 384  ;;  %s362_s14 = int_to_ptr.vmem [resolvable:$true] %s2156_s14 }
  0x29   : > { %p2150_p4 = pnand %p2564_p1, %p1686_p3  ;;  %p1786_p5 = scmp.ne.s32.totalorder %s2549_s3, %s1785_s16 }
  0x2a   : > { %p1792_p12 = scmp.lt.u32.totalorder %s1785_s16, %s2549_s3 }
  0x2b   : > { %p2166_p6 = pneg %p2150_p4 }
  0x2d   : > { %p1788_p8 = pnand %p2166_p6, %p1786_p5 }
  0x2f   : > { %p1789_p9 = pneg %p1788_p8 }
  0x31   : > { %p1794_p13 = pnand %p1792_p12, %p1789_p9 }
  0x33   : > { %1797 = shalt.err (!%p1794_p13)
}
  0x34   : > { %s1798_s27 = scalar_lea.vmem %s2146_s21, 384  ;;  %p1806_p1 = scmp.lt.s32.totalorder %s2146_s21, %s2146_s21 }
  0x35   : > { %p1799_p3 = scmp.ne.s32.totalorder %s2146_s21, %s1798_s27  ;;  %p1807_p11 = scmp.lt.s32.totalorder %s1798_s27, %s1798_s27 }
  0x37   : > { %p1801_p7 = pnand %p1799_p3, %p2166_p6  ;;  %p1808_p5 = por %p1807_p11, %p1806_p1 }
  0x39   : > { %p1802_p0 = pneg %p1801_p7 }
  0x3b   : > { %p1809_p8 = pnand %p1808_p5, %p1802_p0 }
  0x3d   : > { %1812 = shalt.err (!%p1809_p8)
}
  0x3e   : > { %s2009_s30 = smov 128   ;;  %s2010_s16 = smov 8  }
  0x3f   : > { %1692 = dma.hbm_to_vmem [thread:$0]  (!%p2150_p4), %s2549_s3, 384, %s2146_s21, [#allocation8], %s2009_s30, %s2009_s30, %s2010_s16  }
  0x40   : > { %s1813_s18 = scalar_lea.hbm %s2548_s2, 256 }
  0x41   : > { %p1814_p7 = scmp.ne.s32.totalorder %s2548_s2, %s1813_s18  ;;  %p1820_p1 = scmp.lt.u32.totalorder %s1813_s18, %s2548_s2 }
  0x43   : > { %p1816_p11 = pnand %p1814_p7, %p2166_p6 }
  0x45   : > { %p1817_p0 = pneg %p1816_p11 }
  0x47   : > { %p1822_p9 = pnand %p1820_p1, %p1817_p0 }
  0x49   : > { %1825 = shalt.err (!%p1822_p9)
}
  0x4a   : > { %s1826_s21 = scalar_lea.vmem %s2154_s24, 256  ;;  %p1834_p5 = scmp.lt.s32.totalorder %s2154_s24, %s2154_s24 }
  0x4b   : > { %p1827_p12 = scmp.ne.s32.totalorder %s2154_s24, %s1826_s21  ;;  %p1835_p8 = scmp.lt.s32.totalorder %s1826_s21, %s1826_s21 }
  0x4d   : > { %p1829_p13 = pnand %p1827_p12, %p2166_p6  ;;  %p1836_p7 = por %p1835_p8, %p1834_p5 }
  0x4f   : > { %p1830_p3 = pneg %p1829_p13 }
  0x51   : > { %p1837_p11 = pnand %p1836_p7, %p1830_p3 }
  0x53   : > { %1840 = shalt.err (!%p1837_p11)
}
  0x54   : > { %1689 = dma.hbm_to_vmem [thread:$0]  (!%p2150_p4), %s2548_s2, 256, %s2154_s24, [#allocation5], %s2009_s30, %s2009_s30, %s2010_s16  }
  0x55   : > { %s1841_s15 = scalar_lea.hbm %s2555_s9, 384 }
  0x56   : > { %p1842_p0 = scmp.ne.s32.totalorder %s2555_s9, %s1841_s15  ;;  %p1848_p12 = scmp.lt.u32.totalorder %s1841_s15, %s2555_s9 }
  0x58   : > { %p1844_p1 = pnand %p1842_p0, %p2166_p6 }
  0x5a   : > { %p1845_p9 = pneg %p1844_p1 }
  0x5c   : > { %p1850_p13 = pnand %p1848_p12, %p1845_p9 }
  0x5e   : > { %1853 = shalt.err (!%p1850_p13)
}
  0x5f   : > { %s1854_s21 = scalar_lea.vmem %s362_s14, 384  ;;  %p1862_p7 = scmp.lt.s32.totalorder %s362_s14, %s362_s14 }
  0x60   : > { %p1855_p3 = scmp.ne.s32.totalorder %s362_s14, %s1854_s21  ;;  %p1863_p11 = scmp.lt.s32.totalorder %s1854_s21, %s1854_s21 }
  0x62   : > { %p1857_p5 = pnand %p1855_p3, %p2166_p6  ;;  %p1864_p10 = por %p1863_p11, %p1862_p7 }
  0x64   : > { %p1858_p8 = pneg %p1857_p5 }
  0x66   : > { %p1865_p2 = pnand %p1864_p10, %p1858_p8 }
  0x68   : > { %1868 = shalt.err (!%p1865_p2)
}
  0x69   : > { %1695 = dma.hbm_to_vmem [thread:$0]  (!%p2150_p4), %s2555_s9, 384, %s362_s14, [#allocation8]  }
  0x6a   : > { %p2584_p0 = scmp.ne.s32.totalorder %s2581_s19, 0 }
  0x6b   : > { %p2585_p1 = scmp.eq.s32.totalorder (!%p2584_p0), %s2107_s29, 0 }
  0x6c   : > { %374 = sbr.rel (%p2584_p0) target bundleno = 1917 (0x77d), region = 56 }
  0x73   : > { %1970 = dma.done.wait (%p2585_p1), [#allocation5], 256   ;;  %p2586_p6 = pmov %p2585_p1 }
  0x74   : > { %p2587_p9 = pmov %p2585_p1 }
  0x75   : > { %1972 = vsyncadd (%p2586_p6), [#allocation5], 4294967040 }
  0x76   : > { %1974 = dma.done.wait (%p2587_p9), [#allocation8], 768   ;;  %p2588_p10 = pmov %p2585_p1 }
  0x77   : > { %s2240_s13 = sand.u32 1, %s1995_s26   ;;  %p2589_p2 = scmp.ne.s32.totalorder %s2107_s29, 0 }
  0x78   : > { %1976 = vsyncadd (%p2588_p10), [#allocation8], 4294966528  ;;  %s411_s22 = scalar_lea.vmem [#allocation10], %s2240_s13  ;;  %s417_s19 = scalar_lea.vmem [#allocation11], %s2240_s13  ;;  %v424_v0 = vld [vmem:[%s2547_s1] sm:$0x1] (!%p2589_p2) }
  0x79   : > { %423 = sbr.rel (%p2589_p2) target bundleno = 128 (0x80), region = 72  ;;  %vm425_vm0 = vcmask (!%p2589_p2), 253952  }
  0x7a   : > { %426 = vst.msk [vmem:[#allocation13] sm:$0x1] (!%p2589_p2), %vm425_vm0, %v424_v0 }
  0x80 PF: > { %v442_v1 = vld [vmem:[%s2550_s4 + $0x20] sm:$0xff]  ;;  %v443_v2 = vld [vmem:[%s2550_s4 + $0x28] sm:$0xff]  ;;  %v2011_v4 = vmov 0.0|0.0   ;;  %v444_v7 = vld [vmem:[%s2550_s4 + $0x30] sm:$0xff]  ;;  %s428_s14 = sld [smem:[#allocation3 + %s2107_s29]]  ;;  %vm2012_vm1 = vmmov 0  }
  0x81   : > { %v438_v3 = vld [vmem:[%s2550_s4] sm:$0xff]  ;;  %1598 = vmatprep.subr.bf16.mxu0 %v2011_v4  ;;  %1604 = vmatprep.subr.bf16.mxu1 %v2011_v4  ;;  %v1599_v5 = vpack.c.bf16 %v443_v2, %v442_v1  ;;  %v439_v6 = vld [vmem:[%s2550_s4 + $0x8] sm:$0xff]  ;;  %v445_v8 = vld [vmem:[%s2550_s4 + $0x38] sm:$0xff]  ;;  %v2013_v12 = vmov 0.0   ;;  %vm446_vm2 = vcmask 261120   ;;  %vm594_vm3 = vcmask 73728  }
  0x82   : > { %v1605_v9 = vpack.c.bf16 %v439_v6, %v438_v3  ;;  %v440_v10 = vld [vmem:[%s2550_s4 + $0x10] sm:$0xff]  ;;  %v441_v11 = vld [vmem:[%s2550_s4 + $0x18] sm:$0xff]  ;;  %1522 = vmatprep.mubr.msk.f32.mxu0 %vm2012_vm1, %v2013_v12  ;;  %1533 = vmatprep.mubr.msk.f32.mxu1 %vm2012_vm1, %v2013_v12  ;;  %v1602_v13 = vpack.c.bf16 %v445_v8, %v444_v7  ;;  %v2282_v15 = vld [vmem:[#allocation13] sm:$0x1]  ;;  %vm612_vm4 = vcmask 1041408   ;;  %vm2014_vm5 = vmmov 1  }
  0x83   : > { %1600 = vmatpush3.bf16.msra.mxu0 %v1599_v5  ;;  %v1608_v14 = vpack.c.bf16 %v441_v11, %v440_v10  ;;  %v431_v20 = vld [vmem:[#allocation9] ss:$0 sm:$0xff]  ;;  %v606_v30 = vld [vmem:[#allocation4] sm:$0xff]  ;;  %vm1612_vm6 = vmpackc.low %vm612_vm4, %vm2014_vm5  ;;  %vm608_vm7 = vcmask 80896   ;;  %vm1291_vm8 = vcmask 253952   ;;  %vm1278_vm9 = vcmask 155648  }
  0x84   : > { %1606 = vmatpush3.bf16.msra.mxu1 %v1605_v9  ;;  %1601 = vmatprep.subr.bf16.mxu0 %v2011_v4  ;;  %v607_v31 = vld [vmem:[#allocation4 + $0x8] sm:$0x3]  ;;  %v690_v33 = vld [vmem:[%s2551_s5 + $0x20] sm:$0xff]  ;;  %v692_v36 = vld [vmem:[%s2551_s5 + $0x30] sm:$0xff]  ;;  %s1299_s23 = sand.u32 1, %s2107_s29   ;;  %s1470_s25 = sshll.u32 %s2107_s29, 4 }
  0x85   : > { %1607 = vmatprep.subr.bf16.mxu1 %v2011_v4  ;;  %v1611_v32 = vpack.c.bf16 %v607_v31, %v606_v30  ;;  %v691_v34 = vld [vmem:[%s2551_s5 + $0x28] sm:$0xff]  ;;  %v693_v37 = vld [vmem:[%s2551_s5 + $0x38] sm:$0xff]  ;;  %v686_v40 = vld [vmem:[%s2551_s5] sm:$0xff]  ;;  %s2447_s24 = scalar_lea.hbm %s2557_s11, %s1470_s25  ;;  %s1325_s30 = sshll.u32 %s417_s19, 4  ;;  %s1326_s30 = int_to_ptr.vmem [resolvable:$true] %s1325_s30 }
  0x86   : > { %s429_s18 = scalar_lea.vmem [#allocation7], %s428_s14  ;;  %v1615_v35 = vpack.c.bf16 %v691_v34, %v690_v33  ;;  %v1618_v38 = vpack.c.bf16 %v693_v37, %v692_v36  ;;  %v687_v41 = vld [vmem:[%s2551_s5 + $0x8] sm:$0xff]  ;;  %v688_v45 = vld [vmem:[%s2551_s5 + $0x10] sm:$0xff]  ;;  %v689_v46 = vld [vmem:[%s2551_s5 + $0x18] sm:$0xff]  ;;  %s1300_s14 = scalar_lea.sflag [#allocation12], %s1299_s23 }
  0x87   : > { %1603 = vmatpush3.bf16.msra.mxu0 %v1602_v13  ;;  %v430_v16 = vld [vmem:[%s429_s18] sm:$0x1]  ;;  %v1621_v43 = vpack.c.bf16 %v687_v41, %v686_v40  ;;  %v1624_v47 = vpack.c.bf16 %v689_v46, %v688_v45  ;;  %v840_v48 = vld [vmem:[%s2552_s6 + $0x8] sm:$0xff]  ;;  %v842_v52 = vld [vmem:[%s2552_s6 + $0x18] sm:$0xff]  ;;  %s1869_s16 = scalar_lea.vmem %s1326_s30, 16  ;;  %p2590_p12 = scmp.ne.s32.totalorder %s2578_s17, 0 }
  0x88   : > { %1609 = vmatpush3.bf16.msra.mxu1 %v1608_v14  ;;  %1610 = vmatprep.subr.bf16.mxu0 %v2011_v4  ;;  %v843_v49 = vld [vmem:[%s2552_s6 + $0x20] sm:$0xff]  ;;  %v841_v58 = vld [vmem:[%s2552_s6 + $0x10] sm:$0xff]  ;;  %v844_v59 = vld [vmem:[%s2552_s6 + $0x28] sm:$0xff]  ;;  %p1870_p4 = scmp.ne.s32.totalorder %s1326_s30, %s1869_s16  ;;  %s2015_s10 = smov [#allocation11]  }
  0x89   : > { %1614 = vmatprep.subr.bf16.mxu1 %v2011_v4  ;;  %v1626_v50 = vpack.c.bf16 %v843_v49, %v840_v48  ;;  %v839_v51 = vld [vmem:[%s2552_s6] sm:$0xff]  ;;  %v1635_v60 = vpack.c.bf16 %v844_v59, %v841_v58  ;;  %v846_v61 = vld [vmem:[%s2552_s6 + $0x38] sm:$0xff]  ;;  %v849_v62 = vld [vmem:[%s2552_s6 + $0x50] sm:$0xff]  ;;  %s1873_s0 = sshll.u32 %s2015_s10, 4  ;;  %s1874_s0 = int_to_ptr.vmem [resolvable:$false] %s1873_s0 }
  0x8a   : > { %1523 = vmatmul.mubr.msk.f32.vlgmr.msra.gmra.mrb[0].mxu0 %vm446_vm2, %v2282_v15  ;;  %v1628_v53 = vpack.c.bf16 %v842_v52, %v839_v51  ;;  %v1630_v63 = vpack.c.bf16 %v849_v62, %v846_v61  ;;  %v845_v0 = vld [vmem:[%s2552_s6 + $0x30] sm:$0xff]  ;;  %v848_v1 = vld [vmem:[%s2552_s6 + $0x48] sm:$0xff]  ;;  %v847_v2 = vld [vmem:[%s2552_s6 + $0x40] sm:$0xff]  ;;  %p1871_p13 = pnand %p1870_p4, %p2590_p12  ;;  %s1875_s28 = scalar_lea.vmem %s1874_s0, 32 }
  0x8b   : > { %1534 = vmatmul.mubr.msk.f32.vlgmr.msra.gmra.mrb[0].mxu1 %vm446_vm2, %v430_v16  ;;  %1540 = vmatprep.mubr.msk.f32.mxu0 %vm2012_vm1, %v2013_v12  ;;  %v1632_v3 = vpack.c.bf16 %v848_v1, %v845_v0  ;;  %v850_v5 = vld [vmem:[%s2552_s6 + $0x58] sm:$0xff]  ;;  %v1012_v7 = vld [vmem:[%s2553_s7 + $0x8] sm:$0xff]  ;;  %v1015_v8 = vld [vmem:[%s2553_s7 + $0x20] sm:$0xff]  ;;  %p1876_p5 = scmp.lt.s32.totalorder %s1326_s30, %s1874_s0  ;;  %p1877_p8 = scmp.lt.s32.totalorder %s1875_s28, %s1869_s16 }
  0x8c   : > { %1551 = vmatprep.mubr.msk.f32.mxu1 %vm2012_vm1, %v2013_v12  ;;  %1613 = vmatpush3.bf16.msk.msra.mxu0 %vm1612_vm6, %v1611_v32  ;;  %v1638_v6 = vpack.c.bf16 %v850_v5, %v847_v2  ;;  %v1640_v9 = vpack.c.bf16 %v1015_v8, %v1012_v7  ;;  %v432_v10 = vld [vmem:[#allocation9 + $0x1] ss:$0 sm:$0xff]  ;;  %v1022_v30 = vld [vmem:[%s2553_s7 + $0x58] sm:$0xff]  ;;  %v1201_v33 = vld [vmem:[%s2554_s8] sm:$0xff]  ;;  %p1872_p3 = pneg %p1871_p13 }
  0x8d   : > { %1620 = vmatprep.subr.bf16.mxu0 %v2011_v4  ;;  %1616 = vmatpush3.bf16.msra.mxu1 %v1615_v35  ;;  %v1202_v34 = vld [vmem:[%s2554_s8 + $0x8] sm:$0xff]  ;;  %v1203_v35 = vld [vmem:[%s2554_s8 + $0x10] sm:$0xff]  ;;  %v1204_v37 = vld [vmem:[%s2554_s8 + $0x18] sm:$0xff]  ;;  %p1878_p7 = por %p1877_p8, %p1876_p5 }
  0x8e   : > { %1617 = vmatprep.subr.bf16.mxu1 %v2011_v4  ;;  %v1655_v36 = vpack.c.bf16 %v1202_v34, %v1201_v33  ;;  %v436_v41 = vld [vmem:[#allocation9 + $0x3] ss:$8 sm:$0x7] }
  0x8f   : > { %p1879_p11 = pnand %p1878_p7, %p1872_p3 }
  0x91   : > { %1619 = vmatpush3.bf16.msra.mxu1 %v1618_v38  ;;  %v1658_v38 = vpack.c.bf16 %v1204_v37, %v1203_v35 }
  0x92   : > { %1627 = vmatprep.subr.bf16.mxu1 %v1626_v50 }
 0x15d   : > { %v516_v17 = vpop.f32.mrb[0].mxu0 }
 0x15e   : > { %v589_v18 = vpop.f32.mrb[0].mxu1  ;;  %v1524_v19 = vpop.f32.mrb[1].mxu0 }
 0x15f   : > { %v590_v21 = vadd.f32 %v589_v18, %v516_v17  ;;  %v1535_v22 = vpop.f32.mrb[1].mxu1  ;;  %v1014_v17 = vld [vmem:[%s2553_s7 + $0x18] sm:$0xff]  ;;  %v1021_v19 = vld [vmem:[%s2553_s7 + $0x50] sm:$0xff] }
 0x160   : > { %v1018_v18 = vld [vmem:[%s2553_s7 + $0x38] sm:$0xff] }
 0x161   : > { %v593_v23 = vadd.f32 %v590_v21, %v431_v20  ;;  %v1013_v20 = vld [vmem:[%s2553_s7 + $0x10] sm:$0xff]  ;;  %v1016_v21 = vld [vmem:[%s2553_s7 + $0x28] sm:$0xff] }
 0x163   : > { %v595_v24 = vsel %vm594_vm3, %v593_v23, -inf }
 0x164   : > { %596 = vmax.xlane.f32.xlu0 %v595_v24 }
 0x1f1   : > { %v597_v25 = vpop.xlane.xlu0 %596 }
 0x1f2   : > { %v598_v26 = vsub.f32 %v593_v23, %v597_v25  ;;  %v1644_v25 = vpack.c.bf16 %v1021_v19, %v1018_v18  ;;  %v437_v18 = vld [vmem:[#allocation9 + $0x4] ss:$0 sm:$0xff] }
 0x1f4   : > { %v599_v27 = vmul.f32 1.442695, %v598_v26  ;;  %v1017_v26 = vld [vmem:[%s2553_s7 + $0x30] sm:$0xff] }
 0x1f6   : > { %1755 = vpow2.f32 %v599_v27  ;;  %v1020_v27 = vld [vmem:[%s2553_s7 + $0x48] sm:$0xff] }
 0x1f7   : > { %v1646_v31 = vpack.c.bf16 %v1020_v27, %v1017_v26 }
 0x200   : > { %v1756_v28 = vpop.eup %1755 }
 0x201   : > { %v601_v29 = vsel %vm594_vm3, %v1756_v28, 0.0 }
 0x202   : > { %602 = vadd.xlane.f32.xlu0 %v601_v29  ;;  %v1019_v29 = vld [vmem:[%s2553_s7 + $0x40] sm:$0xff] }
 0x203   : > { %v1652_v32 = vpack.c.bf16 %v1022_v30, %v1019_v29 }
 0x28f   : > { %v603_v39 = vpop.xlane.xlu0 %602 }
 0x290   : > { %1757 = vrcp.f32 %v603_v39 }
 0x29a   : > { %v1758_v42 = vpop.eup %1757 }
 0x29b   : > { %v605_v44 = vmul.f32 %v1758_v42, %v1756_v28  ;;  %v1649_v28 = vpack.c.bf16 %v1016_v21, %v1013_v20 }
 0x29d   : > { %1294 = vst.msk [vmem:[%s417_s19] sm:$0x1] %vm594_vm3, %v605_v44  ;;  %1541 = vmatmul.mubr.msk.f32.vlgmr.msra.gmra.mrb[2].mxu0 %vm608_vm7, %v605_v44 }
 0x29e   : > { %1622 = vmatpush3.bf16.msra.mxu0 %v1621_v43  ;;  %1562 = vmatprep.mubr.msk.f32.mxu0 %vm2012_vm1, %v2013_v12  ;;  %v434_v43 = vld [vmem:[#allocation9 + $0x2] ss:$8 sm:$0x7] }
 0x29f   : > { %1623 = vmatprep.subr.bf16.mxu0 %v2011_v4 }
 0x2a2   : > { %1625 = vmatpush3.bf16.msra.mxu0 %v1624_v47 }
 0x2a3   : > { %1634 = vmatprep.subr.bf16.mxu0 %v2011_v4 }
 0x2a5   : > { %1563 = vmatmul.mubr.msk.f32.vlgmr.msra.gmra.mrb[4].mxu0 %vm446_vm2, %v430_v16  ;;  %v1011_v16 = vld [vmem:[%s2553_s7] sm:$0xff] }
 0x2a6   : > { %1573 = vmatprep.mubr.msk.f32.mxu0 %vm2012_vm1, %v2013_v12  ;;  %1636 = vmatpush3.bf16.msra.mxu0 %v1635_v60  ;;  %v1642_v23 = vpack.c.bf16 %v1014_v17, %v1011_v16 }
 0x2a7   : > { %1637 = vmatprep.subr.bf16.mxu0 %v2011_v4 }
 0x2aa   : > { %1639 = vmatpush3.bf16.msra.mxu0 %v1638_v6 }
 0x2ab   : > { %1648 = vmatprep.subr.bf16.mxu0 %v2011_v4 }
 0x370   : > { %v682_v54 = vpop.f32.mrb[2].mxu0 }
 0x371   : > { %v1542_v55 = vpop.f32.mrb[3].mxu0  ;;  %1552 = vmatmul.mubr.msk.f32.vlgmr.msra.gmra.mrb[2].mxu1 %vm446_vm2, %v682_v54 }
 0x372   : > { %1629 = vmatpush1.bf16.msra.mxu1 %v1628_v53  ;;  %934 = vmatprep.mubr.f32.mxu1 %v2013_v12 }
 0x373   : > { %1631 = vmatprep.subr.bf16.mxu1 %v1630_v63 }
 0x376   : > { %1633 = vmatpush1.bf16.msra.mxu1 %v1632_v3 }
 0x377   : > { %1641 = vmatprep.subr.bf16.mxu1 %v1640_v9 }
 0x378   : > { %v833_v56 = vpop.f32.mrb[4].mxu0 }
 0x379   : > { %v1564_v57 = vpop.f32.mrb[5].mxu0 }
 0x444   : > { %v763_v11 = vpop.f32.mrb[2].mxu1 }
 0x445   : > { %v834_v13 = vadd.f32 %v833_v56, %v763_v11  ;;  %v1553_v14 = vpop.f32.mrb[3].mxu1 }
 0x447   : > { %v837_v22 = vadd.f32 %v834_v13, %v432_v10 }
 0x449   : > { %v838_v24 = vmax.f32 %v837_v22, 0.0 }
 0x44b   : > { %1465 = vmatmul.mubr.msk.f32.vlgmr.msra.gmra.mrb[4].mxu1 %vm446_vm2, %v838_v24  ;;  %1574 = vmatmul.mubr.msk.f32.vlgmr.msra.gmra.mrb[6].mxu0 %vm446_vm2, %v838_v24 }
 0x44c   : > { %1643 = vmatpush1.bf16.msra.mxu1 %v1642_v23  ;;  %1103 = vmatprep.mubr.f32.mxu1 %v2013_v12 }
 0x44d   : > { %1645 = vmatprep.subr.bf16.mxu1 %v1644_v25  ;;  %1650 = vmatpush3.bf16.msra.mxu0 %v1649_v28 }
 0x44e   : > { %1651 = vmatprep.subr.bf16.mxu0 %v2011_v4  ;;  %1584 = vmatprep.mubr.msk.f32.mxu0 %vm2012_vm1, %v2013_v12 }
 0x450   : > { %1647 = vmatpush1.bf16.msra.mxu1 %v1646_v31 }
 0x451   : > { %1653 = vmatpush3.bf16.msra.mxu0 %v1652_v32  ;;  %1654 = vmatprep.subr.bf16.mxu1 %v2011_v4 }
 0x453   : > { %1467 = vmatmul.mubr.msk.f32.vlgmr.msra.gmra.mrb[4].mxu1 %vm446_vm2, %v2282_v15 }
 0x454   : > { %1585 = vmatmul.mubr.msk.f32.vlgmr.msra.gmra.mrb[8].mxu0 %vm446_vm2, %v2282_v15  ;;  %1595 = vmatprep.mubr.msk.f32.mxu1 %vm2012_vm1, %v2013_v12  ;;  %v852_v12 = vlaneseq }
 0x455   : > { %1656 = vmatpush3.bf16.msra.mxu1 %v1655_v36 }
 0x456   : > { %1657 = vmatprep.subr.bf16.mxu1 %v2011_v4  ;;  %v853_v39 = vshrl.u32 %v852_v12, 7 }
 0x458   : > { %v854_v40 = vsub.s32 0, %v853_v39  ;;  %v858_v42 = vsub.s32 1, %v853_v39  ;;  %v862_v63 = vsub.s32 2, %v853_v39 }
 0x459   : > { %1659 = vmatpush3.bf16.msra.mxu1 %v1658_v38 }
 0x45a   : > { %v855_v46 = vrot.slane %v434_v43, %v854_v40  ;;  %v1027_v47 = vrot.slane %v436_v41, %v854_v40  ;;  %v859_v48 = vrot.slane %v434_v43, %v858_v42  ;;  %v1031_v49 = vrot.slane %v436_v41, %v858_v42 }
 0x45b   : > { %v1035_v0 = vrot.slane %v436_v41, %v862_v63  ;;  %v863_v2 = vrot.slane %v434_v43, %v862_v63 }
 0x45c   : > { %v1660_v50 = vadd.f32 %v1027_v47, %v855_v46  ;;  %v1662_v51 = vadd.f32 %v1031_v49, %v859_v48 }
 0x51e   : > { %v1007_v44 = vpop.f32.mrb[6].mxu0 }
 0x51f   : > { %v1575_v45 = vpop.f32.mrb[7].mxu0  ;;  %v1008_v7 = vadd.f32 %v1007_v44, %v863_v2 }
 0x526   : > { %v1105_v52 = vpop.f32.mrb[4].mxu1 }
 0x527   : > { %v1661_v53 = vadd.f32 %v1660_v50, %v1105_v52  ;;  %v1107_v54 = vpop.f32.mrb[5].mxu1  ;;  %v1176_v55 = vpop.f32.mrb[8].mxu0 }
 0x528   : > { %v1663_v4 = vadd.f32 %v1662_v51, %v1107_v54  ;;  %v1586_v56 = vpop.f32.mrb[9].mxu0  ;;  %v1177_v5 = vadd.f32 %v1176_v55, %v1035_v0 }
 0x529   : > { %v1181_v57 = vsub.f32 0.0, %v1661_v53 }
 0x52a   : > { %v1188_v59 = vsub.f32 0.0, %v1663_v4 }
 0x52b   : > { %v1182_v58 = vmul.f32 1.442695, %v1181_v57 }
 0x52c   : > { %v1189_v60 = vmul.f32 1.442695, %v1188_v59 }
 0x52d   : > { %1759 = vpow2.f32 %v1182_v58 }
 0x52e   : > { %1761 = vpow2.f32 %v1189_v60 }
 0x537   : > { %v1760_v61 = vpop.eup %1759 }
 0x538   : > { %v1184_v62 = vadd.f32 1.0, %v1760_v61  ;;  %v1762_v1 = vpop.eup %1761 }
 0x539   : > { %v1191_v3 = vadd.f32 1.0, %v1762_v1 }
 0x53a   : > { %1763 = vrcp.f32 %v1184_v62 }
 0x53b   : > { %1765 = vrcp.f32 %v1191_v3 }
 0x544   : > { %v1764_v6 = vpop.eup %1763 }
 0x545   : > { %v1194_v8 = vmul.f32 %v1764_v6, %v1177_v5  ;;  %v1766_v10 = vpop.eup %1765 }
 0x546   : > { %v1197_v11 = vsub.f32 1.0, %v1766_v10  ;;  %v1199_v16 = vmul.f32 %v1766_v10, %v2282_v15 }
 0x547   : > { %v1195_v9 = vadd.f32 %v1194_v8, %v1008_v7 }
 0x549   : > { %1767 = vtanh.f32 %v1195_v9 }
 0x553   : > { %v1768_v13 = vpop.eup %1767 }
 0x554   : > { %v1198_v14 = vmul.f32 %v1768_v13, %v1197_v11 }
 0x556   : > { %v1200_v17 = vadd.f32 %v1199_v16, %v1198_v14 }
 0x558   : > { %1596 = vmatmul.mubr.msk.f32.vlgmr.msra.gmra.mrb[6].mxu1 %vm446_vm2, %v1200_v17  ;;  %1292 = vst.msk [vmem:[#allocation13] sm:$0x1] %vm1291_vm8, %v1200_v17 }
 0x62b   : > { %v1274_v19 = vpop.f32.mrb[6].mxu1 }
 0x62c   : > { %v1275_v20 = vadd.f32 %v1274_v19, %v437_v18  ;;  %v1597_v21 = vpop.f32.mrb[7].mxu1 }
 0x62e   : > { %v1279_v22 = vsel %vm1278_vm9, %v1275_v20, -inf }
 0x62f   : > { %1280 = vmax.xlane.f32.xlu1 %v1279_v22 }
 0x6bc   : > { %v1281_v23 = vpop.xlane.xlu1 %1280 }
 0x6bd   : > { %v2436_v15 = vsub.f32 %v1275_v20, %v1281_v23 }
 0x6bf   : > { %v1283_v24 = vmul.f32 1.442695, %v2436_v15 }
 0x6c1   : > { %1769 = vpow2.f32 %v1283_v24 }
 0x6cb   : > { %v1770_v25 = vpop.eup %1769 }
 0x6cc   : > { %v1285_v26 = vsel %vm1278_vm9, %v1770_v25, 0.0 }
 0x6cd   : > { %1286 = vadd.xlane.f32.xlu1 %v1285_v26 }
 0x6ce   : > { %1882 = shalt.err (!%p1879_p11)
}
 0x6cf   : > { %s1883_s19 = scalar_lea.hbm %s2447_s24, 16  ;;  %s1887_s20 = scalar_lea.hbm %s2557_s11, 128 }
 0x6d0   : > { %p1884_p0 = scmp.ne.s32.totalorder %s2447_s24, %s1883_s19  ;;  %p1888_p9 = scmp.lt.u32.totalorder %s2447_s24, %s2557_s11 }
 0x6d1   : > { %p1889_p10 = scmp.lt.u32.totalorder %s1887_s20, %s1883_s19  ;;  %p1891_p4 = scmp.lt.u32.totalorder %s1883_s19, %s2447_s24 }
 0x6d2   : > { %p1885_p1 = pnand %p1884_p0, %p2590_p12 }
 0x6d3   : > { %p1890_p2 = por %p1889_p10, %p1888_p9 }
 0x6d4   : > { %p1886_p6 = pneg %p1885_p1 }
 0x6d5   : > { %p1892_p13 = por %p1891_p4, %p1890_p2 }
 0x6d7   : > { %p1893_p3 = pnand %p1892_p13, %p1886_p6 }
 0x6d9   : > { %1896 = shalt.err (!%p1893_p3)
}
 0x6da   : > { %1679 = dma.vmem_to_hbm [thread:$0]  (%p2590_p12), %s1326_s30, 16, %s2447_s24, %s1300_s14  }
 0x6db   : > { %s2016_s21 = smov [#allocation13]   ;;  %p2591_p8 = scmp.eq.s32.totalorder %s2107_s29, 7 }
 0x6dc   : > { %s1336_s16 = sshll.u32 %s2016_s21, 4  ;;  %s1337_s16 = int_to_ptr.vmem [resolvable:$true] %s1336_s16 }
 0x6dd   : > { %s1897_s10 = scalar_lea.vmem %s1337_s16, 16  ;;  %s1903_s0 = scalar_lea.vmem %s1337_s16, 32 }
 0x6de   : > { %p1898_p5 = scmp.ne.s32.totalorder %s1337_s16, %s1897_s10  ;;  %p1904_p0 = scmp.lt.s32.totalorder %s1337_s16, %s1337_s16 }
 0x6df   : > { %p1905_p1 = scmp.lt.s32.totalorder %s1903_s0, %s1897_s10 }
 0x6e0   : > { %p1899_p7 = pnand %p1898_p5, %p2591_p8 }
 0x6e1   : > { %p1906_p9 = por %p1905_p1, %p1904_p0 }
 0x6e2   : > { %p1900_p11 = pneg %p1899_p7 }
 0x6e4   : > { %p1907_p10 = pnand %p1906_p9, %p1900_p11 }
 0x6e6   : > { %1910 = shalt.err (!%p1907_p10)
}
 0x6e7   : > { %s1911_s18 = scalar_lea.hbm %s2558_s12, 16  ;;  %p2592_p2 = pmov %p2591_p8 }
 0x6e8   : > { %p1912_p6 = scmp.ne.s32.totalorder %s2558_s12, %s1911_s18  ;;  %p1917_p3 = scmp.lt.u32.totalorder %s1911_s18, %s2558_s12 }
 0x6ea   : > { %p1913_p4 = pnand %p1912_p6, %p2592_p2 }
 0x6ec   : > { %p1914_p13 = pneg %p1913_p4 }
 0x6ee   : > { %p1919_p5 = pnand %p1917_p3, %p1914_p13 }
 0x6f0   : > { %1922 = shalt.err (!%p1919_p5)
}
 0x6f1   : > { %p2593_p8 = pmov %p2592_p2  ;;  %s1312_s27 = sshll.u32 %s411_s22, 4  ;;  %s2496_s27 = int_to_ptr.vmem [resolvable:$true] %s1312_s27 }
 0x6f2   : > { %s2594_s0 = sld [smem:[#allocation26_spill]]  ;;  %s1923_s18 = scalar_lea.vmem %s2496_s27, 16 }
 0x6f3   : > { %1681 = dma.vmem_to_hbm [thread:$0]  (%p2593_p8), %s1337_s16, 16, %s2558_s12, [#allocation12]  }
 0x6f4   : > { %s1296_s16 = scalar_lea.sflag [#allocation6], %s2240_s13  ;;  %p1924_p7 = scmp.ne.s32.totalorder %s2496_s27, %s1923_s18 }
 0x6f5   : > { %s2017_s24 = smov [#allocation10]  }
 0x6f6   : > { %p1925_p11 = pnand %p1924_p7, %p2590_p12  ;;  %s1927_s30 = sshll.u32 %s2017_s24, 4  ;;  %s1928_s30 = int_to_ptr.vmem [resolvable:$false] %s1927_s30 }
 0x6f7   : > { %s1929_s14 = scalar_lea.vmem %s1928_s30, 32  ;;  %p1930_p1 = scmp.lt.s32.totalorder %s2496_s27, %s1928_s30 }
 0x6f8   : > { %s2595_s19 = smov %s2594_s0  ;;  %s2494_s28 = scalar_lea.hbm %s2594_s0, %s1470_s25 }
 0x6f9   : > { %p1926_p0 = pneg %p1925_p11  ;;  %p1931_p9 = scmp.lt.s32.totalorder %s1929_s14, %s1923_s18 }
 0x6fb   : > { %p1932_p10 = por %p1931_p9, %p1930_p1 }
 0x6fd   : > { %p1933_p6 = pnand %p1932_p10, %p1926_p0 }
 0x75a   : > { %v1287_v27 = vpop.xlane.xlu1 %1286 }
 0x75b   : > { %1771 = vlog2.f32 %v1287_v27 }
 0x765   : > { %v1772_v28 = vpop.eup %1771 }
 0x766   : > { %v1289_v29 = vmul.f32 0.6931472, %v1772_v28 }
 0x768   : > { %v1290_v30 = vsub.f32 %v2436_v15, %v1289_v29 }
 0x76a   : > { %1293 = vst.msk [vmem:[%s411_s22] sm:$0x1] %vm1278_vm9, %v1290_v30 }
 0x76b   : > { %1936 = shalt.err (!%p1933_p6)
}
 0x76c   : > { %s1937_s13 = scalar_lea.hbm %s2494_s28, 16  ;;  %s1941_s15 = scalar_lea.hbm %s2595_s19, 128 }
 0x76d   : > { %p1938_p2 = scmp.ne.s32.totalorder %s2494_s28, %s1937_s13  ;;  %p1942_p3 = scmp.lt.u32.totalorder %s2494_s28, %s2595_s19 }
 0x76e   : > { %p1943_p5 = scmp.lt.u32.totalorder %s1941_s15, %s1937_s13  ;;  %p1945_p7 = scmp.lt.u32.totalorder %s1937_s13, %s2494_s28 }
 0x76f   : > { %p1939_p4 = pnand %p1938_p2, %p2590_p12 }
 0x770   : > { %p1944_p8 = por %p1943_p5, %p1942_p3 }
 0x771   : > { %p1940_p13 = pneg %p1939_p4 }
 0x772   : > { %p1946_p11 = por %p1945_p7, %p1944_p8 }
 0x774   : > { %p1947_p0 = pnand %p1946_p11, %p1940_p13 }
 0x776   : > { %1950 = shalt.err (!%p1947_p0)
}
 0x777   : > { %1678 = dma.vmem_to_hbm [thread:$0]  (%p2590_p12), %s2496_s27, 16, %s2494_s28, %s1296_s16  }
 0x778   : > { %p2596_p1 = scmp.eq.s32.totalorder %s2107_s29, 7 }
 0x77a   : > { %1978 = dma.done.wait (%p2596_p1), [#allocation12], 16   ;;  %p2597_p9 = pmov %p2596_p1 }
 0x77c   : > { %1980 = vsyncadd (%p2597_p9), [#allocation12], 4294967280 }
 0x77d PF: > { %s2598_s21 = sld [smem:[#allocation22_spill]]  ;;  %s2599_s10 = sld [smem:[#allocation20_spill]] }
 0x77e   : > { %s2600_s0 = sld [smem:[#allocation25_spill]] }
 0x783   : > { %p1711_p10 = scmp.ge.s32.totalorder %s2598_s21, 2  ;;  %s1352_s18 = sand.u32 1, %s2599_s10  }
 0x784   : > { %p2601_p6 = scmp.ne.s32.totalorder %s2600_s0, 0  ;;  %s1353_s24 = scalar_lea.sflag [#allocation6], %s1352_s18 }
 0x786   : > { %p1697_p2 = pnand %p1711_p10, %p2601_p6 }
 0x788   : > { %1982 = dma.done.wait (!%p1697_p2), %s1353_s24, 16  }
 0x789   : > { %1984 = vsyncadd (!%p1697_p2), %s1353_s24, 4294967280  ;;  %s2602_s17 = sadd.s32 4294967294, %s2598_s21  }
 0x78a   : > { %s1360_s30 = sand.u32 1, %s2602_s17  }
 0x78b   : > { %s1361_s27 = scalar_lea.sflag [#allocation12], %s1360_s30 }
 0x78c   : > { %1986 = dma.done.wait (!%p1697_p2), %s1361_s27, 16  }
 0x78d   : > { %1988 = vsyncadd (!%p1697_p2), %s1361_s27, 4294967280  ;;  %s2603_s28 = sld [smem:[#allocation23_spill]]  ;;  %s2604_s29 = sld [smem:[#allocation21_spill]] }
 0x78e   : > { %s2605_s27 = sld [smem:[#allocation24_spill]]  ;;  %s2606_s0 = smov %s1995_s26 }
 0x793   : > { %p34_p12 = scmp.ge.s32.totalorder %s2603_s28, 10   ;;  %s2607_s26 = smov %s2604_s29 }
 0x795   :  { %36 = sbr.rel (!%p34_p12) target bundleno = 22 (0x16), region = 133 }
 0x79c   :  { %1365 = vsyncpa [#allocation5], 1 }
 0x79d   :  { %1367 = vsyncpa [#allocation5 + $0x1], 1 }
 0x79e   :  { %1368 = vsyncpa [#allocation8], 1 }
 0x79f   :  { %1369 = vsyncpa [#allocation6], 1 }
 0x7a0   :  { %1371 = vsyncpa [#allocation6 + $0x1], 1 }
 0x7a1   :  { %1372 = vsyncpa [#allocation12], 1 }
 0x7a2   :  { %1374 = vsyncpa [#allocation12 + $0x1], 1 }

</bundles_post_ra>
